<compile_context>
chip_gen: v5e
topology: v5e:2x2
jax: 0.10.0
libtpu: 0.0.40
codegen_flags: <defaults>
</compile_context>

<pallas_src>
import functools
import math

import jax
import jax.numpy as jnp
from jax.experimental import pallas as pl
from jax.experimental.pallas import tpu as pltpu


def _merge_kernel(x_ref, wv_ref, b_ref, g_ref, beta_ref, o_ref, *, eps, d_out):
    # x_ref   : [TG, 2, w, 2C]   (dim1 = s1, last dim laid out (s2, c))
    # wv_ref  : [2, 2C, Dp]      (re-packed linear weight, Dp = 2C padded to 128)
    # b_ref   : [1, Dp]          (linear bias)
    # g_ref   : [1, Dp]          (layernorm gamma)
    # beta_ref: [1, Dp]          (layernorm beta)
    # o_ref   : [TG*w, Dp]
    rows = o_ref.shape[0]
    d2c = x_ref.shape[-1]

    xt = x_ref[...]                          # [TG, 2, w, 2C]
    x0 = xt[:, 0].reshape(rows, d2c)         # s1 = 0 rows, (g, w) row-major
    x1 = xt[:, 1].reshape(rows, d2c)         # s1 = 1 rows

    # Linear(4C -> 2C) as two MXU matmuls accumulated in f32.
    y = jnp.dot(x0, wv_ref[0], preferred_element_type=jnp.float32)
    y = y + jnp.dot(x1, wv_ref[1], preferred_element_type=jnp.float32)
    y = y + b_ref[...].astype(jnp.float32)

    # One-pass LayerNorm over the true feature count (padded columns are
    # exactly zero, so they do not perturb the sums).
    ssum = jnp.sum(y, axis=-1, keepdims=True)
    ssq = jnp.sum(y * y, axis=-1, keepdims=True)
    mean = ssum / d_out
    var = ssq / d_out - mean * mean
    inv = jax.lax.rsqrt(var + eps)
    out = (y - mean) * inv * g_ref[...].astype(jnp.float32) \
        + beta_ref[...].astype(jnp.float32)

    o_ref[...] = out.astype(o_ref.dtype)


def merge_forward(x, w, b, gamma, beta, *, eps=1e-5, target_rows=2048):
    """Fused Swin patch merge: rearrange + Linear(4C->2C) + LayerNorm(2C).

    x:              [B, L, C] with L = (2h)^2
    w:              [4C, 2C]  (transposed nn.Linear weight, rows = (s2,s1,c))
    b, gamma, beta: [2C]
    returns         [B, L//4, 2C]
    """
    B, L, C = x.shape
    hh = int(round(math.sqrt(L))) // 2
    ww = hh
    assert (2 * hh) * (2 * ww) == L, f"L={L} is not a perfect (2h)^2 square"
    d_in, d_out = 4 * C, 2 * C
    d2c = 2 * C
    assert w.shape == (d_in, d_out)

    # Lane-dense output: pad the output feature dim to a multiple of 128.
    d_out_p = max(128, ((d_out + 127) // 128) * 128)
    pad = d_out_p - d_out
    if pad:
        w = jnp.pad(w, ((0, 0), (0, pad)))
        b = jnp.pad(b, (0, pad))
        gamma = jnp.pad(gamma, (0, pad))
        beta = jnp.pad(beta, (0, pad))

    # Fold the (s2 s1 c) feature permutation into the (tiny) weight:
    # W row chunk k = s2*2 + s1 multiplies quadrant (s2, s1).  For a fixed s1
    # the kernel sees features ordered (s2, c), so stack the s2=0 / s2=1
    # chunks: V_{s1} = [W[s2=0,s1]; W[s2=1,s1]]  of shape [2C, Dp].
    w4 = w.reshape(2, 2, C, d_out_p)               # [s2, s1, C, Dp]
    wv = jnp.concatenate([w4[0], w4[1]], axis=1)   # [s1, 2C, Dp], rows = (s2, c)
    b2 = b.reshape(1, d_out_p)
    g2 = gamma.reshape(1, d_out_p)
    be2 = beta.reshape(1, d_out_p)

    # Free (row-major) view of x: [B*h, s1, w, (s2 c)].  No HBM copy.
    G = B * hh
    M = G * ww
    x4 = x.reshape(G, 2, ww, d2c)

    # Tile over the merged (B, h) axis.  TG divides G exactly (no padding),
    # TG*w rows per step, sublane-aligned for the output block, sized to a
    # conservative VMEM budget (2 buffers each for the moving x / out tiles).
    itemsize = jnp.dtype(x.dtype).itemsize
    sub = {4: 8, 2: 16, 1: 32}.get(itemsize, 8)
    resident_bytes = 2 * (2 * d2c * d_out_p + 3 * d_out_p) * itemsize
    row_bytes = 2 * (d_in + d_out_p) * itemsize
    budget = 24 * 1024 * 1024
    rows_cap = max(sub, (budget - resident_bytes) // max(row_bytes, 1))
    tgt = max(1, min(target_rows, rows_cap) // ww)

    tg = None
    for d in range(1, G + 1):
        if G % d == 0 and d <= tgt and (d * ww) % sub == 0:
            tg = d
    if tg is None:
        tg = G  # full extent: always a legal block shape
    num_g = G // tg
    rows = tg * ww

    cost = pl.CostEstimate(
        flops=2 * M * d_in * d_out_p,
        transcendentals=M,  # one rsqrt per output row
        bytes_accessed=(M * d_in + M * d_out_p
                        + 2 * d2c * d_out_p + 3 * d_out_p) * itemsize,
    )

    out2d = pl.pallas_call(
        functools.partial(_merge_kernel, eps=eps, d_out=d_out),
        out_shape=jax.ShapeDtypeStruct((M, d_out_p), x.dtype),
        grid_spec=pltpu.PrefetchScalarGridSpec(
            num_scalar_prefetch=0,
            grid=(num_g,),
            in_specs=[
                # x tile: one dense, contiguous DMA per step.
                pl.BlockSpec((tg, 2, ww, d2c), lambda i: (i, 0, 0, 0)),
                # Re-packed weights + bias + LN params: constant index maps,
                # DMA'd once and VMEM-resident across the grid.
                pl.BlockSpec((2, d2c, d_out_p), lambda i: (0, 0, 0)),
                pl.BlockSpec((1, d_out_p), lambda i: (0, 0)),
                pl.BlockSpec((1, d_out_p), lambda i: (0, 0)),
                pl.BlockSpec((1, d_out_p), lambda i: (0, 0)),
            ],
            out_specs=pl.BlockSpec((rows, d_out_p), lambda i: (i, 0)),
        ),
        compiler_params=pltpu.CompilerParams(
            dimension_semantics=("parallel",),
            vmem_limit_bytes=48 * 1024 * 1024,
        ),
        cost_estimate=cost,
    )(x4, wv, b2, g2, be2)

    if pad:
        out2d = out2d[:, :d_out]
    return out2d.reshape(B, hh * ww, d_out)


def _reference(x, w, b, gamma, beta, eps=1e-5):
    B, L, C = x.shape
    hh = int(round(math.sqrt(L))) // 2
    xr = (
        x.reshape(B, hh, 2, hh, 2, C)
        .transpose(0, 1, 3, 4, 2, 5)          # b h w s2 s1 c
        .reshape(B, hh * hh, 4 * C)
    )
    y = xr @ w + b
    mean = y.mean(-1, keepdims=True)
    var = ((y - mean) ** 2).mean(-1, keepdims=True)
    return (y - mean) / jnp.sqrt(var + eps) * gamma + beta


if __name__ == "__main__":
    # Small shapes consistent with Merge: L = (2h)^2 with h = w = 8 -> L = 256.
    # C = 64 gives d_in = 256, d_out = 128 (lane-dense output, aligned tiles).
    B, L, C = 2, 256, 64
    d_in, d_out = 4 * C, 2 * C

    key = jax.random.PRNGKey(0)
    kx, kw, kb, kg, kbe = jax.random.split(key, 5)

    x = jax.random.normal(kx, (B, L, C), dtype=jnp.float32)

    # nn.Linear-style uniform init; weight stored [in, out] (= PyTorch W^T).
    bound = 1.0 / math.sqrt(d_in)
    w = jax.random.uniform(kw, (d_in, d_out), jnp.float32, -bound, bound)
    b = jax.random.uniform(kb, (d_out,), jnp.float32, -bound, bound)
    gamma = 1.0 + 0.1 * jax.random.normal(kg, (d_out,), jnp.float32)
    beta = 0.1 * jax.random.normal(kbe, (d_out,), jnp.float32)

    ref = _reference(x, w, b, gamma, beta)

    # 1) Tiled path: target_rows=32 -> TG=4 -> grid of 4 steps (exercises the
    #    pipelined multi-tile path).
    out_tiled = jax.block_until_ready(
        merge_forward(x, w, b, gamma, beta, target_rows=32))
    # 2) Default path: whole problem in one large tile (grid of 1).
    out_full = jax.block_until_ready(merge_forward(x, w, b, gamma, beta))

    assert out_tiled.shape == (B, L // 4, d_out)
    assert out_full.shape == (B, L // 4, d_out)
    assert jnp.allclose(out_tiled, ref, atol=2e-2, rtol=2e-2), "tiled mismatch"
    assert jnp.allclose(out_full, ref, atol=2e-2, rtol=2e-2), "full mismatch"

    print("KERNEL_OK")
</pallas_src>

<mosaic_0001>
module attributes {stable_mosaic.version = 11 : i64} {
  func.func @_merge_kernel(%arg0: i32, %arg1: memref<4x2x8x128xf32, #tpu.memory_space<vmem>>, %arg2: memref<2x128x128xf32, #tpu.memory_space<vmem>>, %arg3: memref<1x128xf32, #tpu.memory_space<vmem>>, %arg4: memref<1x128xf32, #tpu.memory_space<vmem>>, %arg5: memref<1x128xf32, #tpu.memory_space<vmem>>, %arg6: memref<32x128xf32, #tpu.memory_space<vmem>>) attributes {dimension_semantics = [#tpu.dimension_semantics<parallel>], iteration_bounds = array<i64: 4>, scalar_prefetch = 0 : i64, scratch_operands = 0 : i64, tpu.core_type = #tpu.core_type<tc>, window_params = [{transform_indices = @transform_0, window_bounds = array<i64: 4, 2, 8, 128>}, {pipeline_mode = #tpu.pipeline_mode<synchronous>, transform_indices = @transform_1, window_bounds = array<i64: 2, 128, 128>}, {pipeline_mode = #tpu.pipeline_mode<synchronous>, transform_indices = @transform_2, window_bounds = array<i64: 1, 128>}, {pipeline_mode = #tpu.pipeline_mode<synchronous>, transform_indices = @transform_3, window_bounds = array<i64: 1, 128>}, {pipeline_mode = #tpu.pipeline_mode<synchronous>, transform_indices = @transform_4, window_bounds = array<i64: 1, 128>}, {transform_indices = @transform_5, window_bounds = array<i64: 32, 128>}]} {
    %c0 = arith.constant 0 : index
    %c0_0 = arith.constant 0 : index
    %c0_1 = arith.constant 0 : index
    %c0_2 = arith.constant 0 : index
    %0 = vector.load %arg1[%c0, %c0_0, %c0_1, %c0_2] : memref<4x2x8x128xf32, #tpu.memory_space<vmem>>, vector<4x2x8x128xf32>
    %1 = vector.extract_strided_slice %0 {offsets = [0, 0, 0, 0], sizes = [4, 1, 8, 128], strides = [1, 1, 1, 1]} : vector<4x2x8x128xf32> to vector<4x1x8x128xf32>
    %2 = vector.shape_cast %1 : vector<4x1x8x128xf32> to vector<4x8x128xf32>
    %3 = vector.shape_cast %2 : vector<4x8x128xf32> to vector<32x128xf32>
    %4 = vector.extract_strided_slice %0 {offsets = [0, 1, 0, 0], sizes = [4, 1, 8, 128], strides = [1, 1, 1, 1]} : vector<4x2x8x128xf32> to vector<4x1x8x128xf32>
    %5 = vector.shape_cast %4 : vector<4x1x8x128xf32> to vector<4x8x128xf32>
    %6 = vector.shape_cast %5 : vector<4x8x128xf32> to vector<32x128xf32>
    %c0_3 = arith.constant 0 : index
    %c0_4 = arith.constant 0 : index
    %c0_5 = arith.constant 0 : index
    %7 = vector.load %arg2[%c0_3, %c0_4, %c0_5] : memref<2x128x128xf32, #tpu.memory_space<vmem>>, vector<1x128x128xf32>
    %8 = vector.shape_cast %7 : vector<1x128x128xf32> to vector<128x128xf32>
    %cst = arith.constant dense<0.000000e+00> : vector<32x128xf32>
    %9 = tpu.matmul %3, %8, %cst {dimension_numbers = #tpu.dot_dimension_numbers<[1], [0], [0], [1], [0, 0, 1, 1], [], []>} : vector<32x128xf32>, vector<128x128xf32>, vector<32x128xf32> -> vector<32x128xf32>
    %c1 = arith.constant 1 : index
    %c0_6 = arith.constant 0 : index
    %c0_7 = arith.constant 0 : index
    %10 = vector.load %arg2[%c1, %c0_6, %c0_7] : memref<2x128x128xf32, #tpu.memory_space<vmem>>, vector<1x128x128xf32>
    %11 = vector.shape_cast %10 : vector<1x128x128xf32> to vector<128x128xf32>
    %cst_8 = arith.constant dense<0.000000e+00> : vector<32x128xf32>
    %12 = tpu.matmul %6, %11, %cst_8 {dimension_numbers = #tpu.dot_dimension_numbers<[1], [0], [0], [1], [0, 0, 1, 1], [], []>} : vector<32x128xf32>, vector<128x128xf32>, vector<32x128xf32> -> vector<32x128xf32>
    %13 = arith.addf %9, %12 : vector<32x128xf32>
    %c0_9 = arith.constant 0 : index
    %c0_10 = arith.constant 0 : index
    %14 = vector.load %arg3[%c0_9, %c0_10] : memref<1x128xf32, #tpu.memory_space<vmem>>, vector<1x128xf32>
    %15 = vector.broadcast %14 : vector<1x128xf32> to vector<32x128xf32>
    %16 = arith.addf %13, %15 : vector<32x128xf32>
    %cst_11 = arith.constant dense<0.000000e+00> : vector<32xf32>
    %17 = vector.multi_reduction <add>, %16, %cst_11 [1] : vector<32x128xf32> to vector<32xf32>
    %18 = vector.shape_cast %17 : vector<32xf32> to vector<32x1xf32>
    %19 = arith.mulf %16, %16 : vector<32x128xf32>
    %cst_12 = arith.constant dense<0.000000e+00> : vector<32xf32>
    %20 = vector.multi_reduction <add>, %19, %cst_12 [1] : vector<32x128xf32> to vector<32xf32>
    %21 = vector.shape_cast %20 : vector<32xf32> to vector<32x1xf32>
    %cst_13 = arith.constant 1.280000e+02 : f32
    %22 = vector.broadcast %cst_13 : f32 to vector<32x1xf32>
    %23 = arith.divf %18, %22 : vector<32x1xf32>
    %cst_14 = arith.constant 1.280000e+02 : f32
    %24 = vector.broadcast %cst_14 : f32 to vector<32x1xf32>
    %25 = arith.divf %21, %24 : vector<32x1xf32>
    %26 = arith.mulf %23, %23 : vector<32x1xf32>
    %27 = arith.subf %25, %26 : vector<32x1xf32>
    %cst_15 = arith.constant 9.99999974E-6 : f32
    %28 = vector.broadcast %cst_15 : f32 to vector<32x1xf32>
    %29 = arith.addf %27, %28 : vector<32x1xf32>
    %30 = math.rsqrt %29 : vector<32x1xf32>
    %31 = vector.broadcast %23 : vector<32x1xf32> to vector<32x128xf32>
    %32 = arith.subf %16, %31 : vector<32x128xf32>
    %33 = vector.broadcast %30 : vector<32x1xf32> to vector<32x128xf32>
    %34 = arith.mulf %32, %33 : vector<32x128xf32>
    %c0_16 = arith.constant 0 : index
    %c0_17 = arith.constant 0 : index
    %35 = vector.load %arg4[%c0_16, %c0_17] : memref<1x128xf32, #tpu.memory_space<vmem>>, vector<1x128xf32>
    %36 = vector.broadcast %35 : vector<1x128xf32> to vector<32x128xf32>
    %37 = arith.mulf %34, %36 : vector<32x128xf32>
    %c0_18 = arith.constant 0 : index
    %c0_19 = arith.constant 0 : index
    %38 = vector.load %arg5[%c0_18, %c0_19] : memref<1x128xf32, #tpu.memory_space<vmem>>, vector<1x128xf32>
    %39 = vector.broadcast %38 : vector<1x128xf32> to vector<32x128xf32>
    %40 = arith.addf %37, %39 : vector<32x128xf32>
    %c0_20 = arith.constant 0 : index
    %c0_21 = arith.constant 0 : index
    %41 = vector.load %arg6[%c0_20, %c0_21] : memref<32x128xf32, #tpu.memory_space<vmem>>, vector<32x128xf32>
    tpu.vector_store %arg6[%c0_20, %c0_21], %40 {strides = array<i32>} : memref<32x128xf32, #tpu.memory_space<vmem>>, vector<32x128xf32>,
    return
  }
  func.func @transform_0(%arg0: i32) -> (i32, i32, i32, i32) {
    %c0_i32 = arith.constant 0 : i32
    %c0_i32_0 = arith.constant 0 : i32
    %c0_i32_1 = arith.constant 0 : i32
    %c0_i32_2 = arith.constant 0 : i32
    return %arg0, %c0_i32, %c0_i32_0, %c0_i32_1 : i32, i32, i32, i32
  }
  func.func @transform_1(%arg0: i32) -> (i32, i32, i32) {
    %c0_i32 = arith.constant 0 : i32
    %c0_i32_0 = arith.constant 0 : i32
    %c0_i32_1 = arith.constant 0 : i32
    %c0_i32_2 = arith.constant 0 : i32
    return %c0_i32, %c0_i32_0, %c0_i32_1 : i32, i32, i32
  }
  func.func @transform_2(%arg0: i32) -> (i32, i32) {
    %c0_i32 = arith.constant 0 : i32
    %c0_i32_0 = arith.constant 0 : i32
    %c0_i32_1 = arith.constant 0 : i32
    return %c0_i32, %c0_i32_0 : i32, i32
  }
  func.func @transform_3(%arg0: i32) -> (i32, i32) {
    %c0_i32 = arith.constant 0 : i32
    %c0_i32_0 = arith.constant 0 : i32
    %c0_i32_1 = arith.constant 0 : i32
    return %c0_i32, %c0_i32_0 : i32, i32
  }
  func.func @transform_4(%arg0: i32) -> (i32, i32) {
    %c0_i32 = arith.constant 0 : i32
    %c0_i32_0 = arith.constant 0 : i32
    %c0_i32_1 = arith.constant 0 : i32
    return %c0_i32, %c0_i32_0 : i32, i32
  }
  func.func @transform_5(%arg0: i32) -> (i32, i32) {
    %c0_i32 = arith.constant 0 : i32
    %c0_i32_0 = arith.constant 0 : i32
    return %arg0, %c0_i32 : i32, i32
  }
}

</mosaic_0001>

<bundles_post_ra>
// kernel: tpu_custom_call.1
= control target key start
LH: loop header
LB: loop body
LE: loop exit
PB: predicated region body
PF: predicated region fallthrough
CT: control target
= control target key end

     0   :  { %10 = vsyncpa [#allocation3], 0  ;;  %s1084_s0 = inlined_call_operand.hbm [shape: f32[16,2,8,128], index: 0, kind: input, shape index: {}]   ;;  %s1085_s1 = inlined_call_operand.hbm [shape: f32[2,128,128], index: 1, kind: input, shape index: {}]   ;;  %s1086_s2 = inlined_call_operand.vmem [shape: f32[1,128], index: 2, kind: input, shape index: {}]   ;;  %s1087_s3 = inlined_call_operand.vmem [shape: f32[1,128], index: 3, kind: input, shape index: {}]   ;;  %s1088_s4 = inlined_call_operand.vmem [shape: f32[1,128], index: 4, kind: input, shape index: {}]   ;;  %s1089_s5 = inlined_call_operand.hbm [shape: f32[128,128], index: 5, kind: output, shape index: {}]  }
   0x1   :  { %12 = vsyncpa [#allocation3 + $0x1], 0 }
   0x2   :  { %13 = vsyncpa [#allocation6], 0 }
   0x3   :  { %14 = vsyncpa [#allocation4], 0 }
   0x4   :  { %16 = vsyncpa [#allocation4 + $0x1], 0  ;;  %s881_s18 = smov 0   ;;  %s883_s19 = smov 0  }
   0x5   :  { %s885_s20 = smov 0   ;;  %s887_s21 = smov 0  }
   0x6 LB: > { %s902_s22 = sadd.s32 4294967295, %s843_s21   ;;  %s586_s23 = sadd.s32 4294967294, %s843_s21   ;;  %s843_s21 = sphi %s887_s21, %s1100_s21   ;;  %s839_s20 = sphi %s885_s20, %s1099_s20   ;;  %s835_s19 = sphi %s883_s19, %s1098_s19   ;;  %s831_s18 = sphi %s881_s18, %s1097_s18  }
   0x7   : > { %p42_p0 = scmp.ne.s32.totalorder %s835_s19, %s831_s18  ;;  %p43_p1 = scmp.eq.s32.totalorder %s902_s22, 0 }
   0x8   : > { %p150_p2 = scmp.eq.s32.totalorder %s902_s22, 3  ;;  %p156_p3 = scmp.eq.s32.totalorder %s586_s23, 3 }
   0x9   : > { %p911_p4 = por %p43_p1, %p42_p0  ;;  %p587_p5 = scmp.ge.s32.totalorder %s843_s21, 1 }
   0xa   : > { %p916_p6 = por %p156_p3, %p42_p0  ;;  %p163_p7 = scmp.lt.s32.totalorder %s843_s21, 5 }
   0xb   : > { %s174_s28 = sshll.u32 %s1085_s1, 4  ;;  %s845_s30 = smov [#allocation5]   ;;  %s175_s28 = int_to_ptr.hbm [resolvable:$true] %s174_s28 }
   0xc   : > { %p924_p8 = pnand %p587_p5, %p163_p7  ;;  %s176_s6 = sshll.u32 %s845_s30, 4  ;;  %s177_s6 = int_to_ptr.vmem [resolvable:$true] %s176_s6 }
   0xd   : > { %s933_s7 = sadd.s32 1, %s843_s21   ;;  %s1090_s8 = smov 128  }
   0xe   : > { %p646_p9 = pneg %p924_p8  ;;  %s847_s9 = smov 8  }
   0xf   : > { %s26_s10 = ssub.s32 %s843_s21, %s933_s7  ;;  %s29_s11 = sadd.s32 1, %s839_s20 }
  0x10   : > { %p647_p10 = pnand %p646_p9, %p43_p1  ;;  %p27_p11 = scmp.eq.s32.totalorder %s26_s10, 0 }
  0x11   : > { %p36_p12 = scmp.ne.s32.totalorder %s839_s20, %s835_s19  ;;  %p37_p13 = scmp.eq.s32.totalorder %s843_s21, 0 }
  0x12   : > { %649 = dma.hbm_to_vmem [thread:$0]  (!%p647_p10), %s175_s28, 4096, %s177_s6, [#allocation6], %s1090_s8, %s1090_s8, %s847_s9  }
  0x13   : > { %s945_s12 = scalar_select %p27_p11, %s839_s20, %s29_s11  }
  0x14   : > { %p949_p0 = por %p150_p2, %p36_p12  ;;  %p659_p3 = scmp.lt.s32.totalorder %s843_s21, 4 }
  0x15   : > { %s199_s14 = sand.u32 1, %s839_s20   ;;  %s604_s15 = sshll.u32 %s843_s21, 6 }
  0x16   : > { %p38_p5 = por %p37_p13, %p36_p12  ;;  %s590_s16 = sshll.u32 %s199_s14, 6 }
  0x17   : > { %s209_s26 = scalar_lea.hbm %s1084_s0, %s604_s15  ;;  %s203_s28 = scalar_lea.vmem [#allocation2], %s590_s16 }
  0x18   : > { %s210_s27 = sshll.u32 %s209_s26, 4  ;;  %s212_s30 = sshll.u32 %s203_s28, 4  ;;  %s211_s27 = int_to_ptr.hbm [resolvable:$true] %s210_s27  ;;  %s213_s30 = int_to_ptr.vmem [resolvable:$true] %s212_s30 }
  0x19   : > { %p959_p7 = pnand %p659_p3, %p38_p5  ;;  %s200_s10 = scalar_lea.sflag [#allocation3], %s199_s14 }
  0x1a   : > { %s743_s11 = sshra.s32 %s211_s27, 4  ;;  %s750_s16 = scalar_lea.hbm %s1084_s0, 256  ;;  %s744_s11 = int_to_ptr.hbm [resolvable:$true] %s743_s11 }
  0x1b   : > { %s745_s8 = scalar_lea.hbm %s744_s11, 64  ;;  %p747_p9 = pneg %p959_p7 }
  0x1c   : > { %p746_p2 = scmp.ne.s32.totalorder %s744_s11, %s745_s8  ;;  %p751_p12 = scmp.lt.s32.totalorder %s744_s11, %s1084_s0 }
  0x1d   : > { %p752_p13 = scmp.lt.s32.totalorder %s750_s16, %s745_s8 }
  0x1e   : > { %p748_p10 = pnand %p747_p9, %p746_p2 }
  0x1f   : > { %p753_p3 = por %p752_p13, %p751_p12 }
  0x20   : > { %p749_p11 = pneg %p748_p10 }
  0x22   : > { %p754_p5 = pnand %p753_p3, %p749_p11 }
  0x24   : > { %757 = shalt.err (!%p754_p5)
}
  0x25   : > { %s1096_s14 = smov 128   ;;  %224 = sbr.rel (%p924_p8) target bundleno = 381 (0x17d), region = 40 }
  0x26   : > { %653 = dma.hbm_to_vmem [thread:$0]  (!%p959_p7), %s211_s27, 1024, %s213_s30, %s200_s10, %s1096_s14, %s1096_s14, %s847_s9  }
  0x27   : > { %s979_s28 = sand.u32 (!%p924_p8), 1, %s835_s19  }
  0x28   : > { %s595_s11 = sshll.u32 (!%p924_p8), %s979_s28, 6  ;;  %s227_s8 = scalar_lea.sflag (!%p924_p8), [#allocation3], %s979_s28 }
  0x29   : > { %s983_s15 = scalar_lea.vmem (!%p924_p8), [#allocation2], %s595_s11 }
  0x2a   : > { %818 = dma.done.wait (%p911_p4), %s227_s8, 1024  }
  0x2b   : > { %820 = vsyncadd (%p911_p4), %s227_s8, 4294966272 }
  0x2c   : > { %822 = dma.done.wait (%p43_p1), [#allocation6], 4096  }
  0x2d   : > { %824 = vsyncadd (%p43_p1), [#allocation6], 4294963200  ;;  %v305_v0 = vld [vmem:[#allocation5 + $0xf8] sm:$0xff]  ;;  %v304_v2 = vld [vmem:[#allocation5 + $0xf0] sm:$0xff]  ;;  %v848_v61 = vmov 128.0   ;;  %s597_s30 = sshll.u32 %s979_s28, 5 }
  0x2e   : > { %v288_v1 = vld [vmem:[#allocation5 + $0x78] sm:$0xff]  ;;  %306 = vmatpush.msra.mxu0 %v305_v0  ;;  %606 = vmatpush.msra.mxu2 %v305_v0  ;;  %v287_v3 = vld [vmem:[#allocation5 + $0x70] sm:$0xff]  ;;  %v303_v4 = vld [vmem:[#allocation5 + $0xe8] sm:$0xff]  ;;  %703 = vrcp.f32 %v848_v61  ;;  %s1040_s17 = scalar_lea.vmem [#allocation7], %s597_s30  ;;  %s605_s16 = sshll.u32 %s902_s22, 5 }
  0x2f   : > { %335 = vmatpush.msra.mxu1 %v288_v1  ;;  %622 = vmatpush.msra.mxu3 %v288_v1  ;;  %v286_v5 = vld [vmem:[#allocation5 + $0x68] sm:$0xff]  ;;  %v302_v6 = vld [vmem:[#allocation5 + $0xe0] sm:$0xff]  ;;  %v301_v8 = vld [vmem:[#allocation5 + $0xd8] sm:$0xff]  ;;  %s499_s14 = scalar_lea.hbm %s1089_s5, %s605_s16  ;;  %s500_s22 = sshll.u32 %s1040_s17, 4  ;;  %s501_s22 = int_to_ptr.vmem [resolvable:$true] %s500_s22 }
  0x30   : > { %307 = vmatpush.msra.mxu0 %v304_v2  ;;  %607 = vmatpush.msra.mxu2 %v304_v2  ;;  %v285_v7 = vld [vmem:[#allocation5 + $0x60] sm:$0xff]  ;;  %v284_v9 = vld [vmem:[#allocation5 + $0x58] sm:$0xff]  ;;  %v300_v10 = vld [vmem:[#allocation5 + $0xd0] sm:$0xff]  ;;  %s502_s11 = sshll.u32 %s499_s14, 4  ;;  %s488_s8 = scalar_lea.sflag [#allocation4], %s979_s28  ;;  %s503_s11 = int_to_ptr.hbm [resolvable:$true] %s502_s11 }
  0x31   : > { %336 = vmatpush.msra.mxu1 %v287_v3  ;;  %623 = vmatpush.msra.mxu3 %v287_v3  ;;  %v283_v11 = vld [vmem:[#allocation5 + $0x50] sm:$0xff]  ;;  %v299_v12 = vld [vmem:[#allocation5 + $0xc8] sm:$0xff]  ;;  %v298_v14 = vld [vmem:[#allocation5 + $0xc0] sm:$0xff]  ;;  %s793_s27 = scalar_lea.hbm %s1089_s5, 128 }
  0x32   : > { %308 = vmatpush.msra.mxu0 %v303_v4  ;;  %608 = vmatpush.msra.mxu2 %v303_v4  ;;  %v282_v13 = vld [vmem:[#allocation5 + $0x48] sm:$0xff]  ;;  %v281_v15 = vld [vmem:[#allocation5 + $0x40] sm:$0xff]  ;;  %v297_v16 = vld [vmem:[#allocation5 + $0xb8] sm:$0xff] }
  0x33   : > { %337 = vmatpush.msra.mxu1 %v286_v5  ;;  %624 = vmatpush.msra.mxu3 %v286_v5  ;;  %v280_v17 = vld [vmem:[#allocation5 + $0x38] sm:$0xff]  ;;  %v296_v18 = vld [vmem:[#allocation5 + $0xb0] sm:$0xff]  ;;  %v295_v20 = vld [vmem:[#allocation5 + $0xa8] sm:$0xff] }
  0x34   : > { %309 = vmatpush.msra.mxu0 %v302_v6  ;;  %609 = vmatpush.msra.mxu2 %v302_v6  ;;  %v279_v19 = vld [vmem:[#allocation5 + $0x30] sm:$0xff]  ;;  %v278_v21 = vld [vmem:[#allocation5 + $0x28] sm:$0xff]  ;;  %v294_v22 = vld [vmem:[#allocation5 + $0xa0] sm:$0xff]  ;;  %v704_v62 = vpop.eup %703 }
  0x35   : > { %338 = vmatpush.msra.mxu1 %v285_v7  ;;  %625 = vmatpush.msra.mxu3 %v285_v7  ;;  %v277_v23 = vld [vmem:[#allocation5 + $0x20] sm:$0xff]  ;;  %v293_v24 = vld [vmem:[#allocation5 + $0x98] sm:$0xff]  ;;  %v292_v26 = vld [vmem:[#allocation5 + $0x90] sm:$0xff]  ;;  %v393_v63 = vmul.f32 128.0, %v704_v62  ;;  %vm397_vm0 = vweird.f32 %v704_v62 }
  0x36   : > { %310 = vmatpush.msra.mxu0 %v301_v8  ;;  %610 = vmatpush.msra.mxu2 %v301_v8  ;;  %v276_v25 = vld [vmem:[#allocation5 + $0x18] sm:$0xff]  ;;  %v275_v27 = vld [vmem:[#allocation5 + $0x10] sm:$0xff]  ;;  %v291_v28 = vld [vmem:[#allocation5 + $0x88] sm:$0xff] }
  0x37   : > { %339 = vmatpush.msra.mxu1 %v284_v9  ;;  %626 = vmatpush.msra.mxu3 %v284_v9  ;;  %v274_v29 = vld [vmem:[#allocation5 + $0x8] sm:$0xff]  ;;  %v290_v30 = vld [vmem:[#allocation5 + $0x80] sm:$0xff]  ;;  %v268_v36 = vld [vmem:[%s983_s15 + $0x18] sm:$0xff]  ;;  %v394_v0 = vsub.f32 1.0, %v393_v63 }
  0x38   : > { %311 = vmatpush.msra.mxu0 %v300_v10  ;;  %611 = vmatpush.msra.mxu2 %v300_v10  ;;  %v273_v31 = vld [vmem:[#allocation5] sm:$0xff]  ;;  %v266_v32 = vld [vmem:[%s983_s15 + $0x8] sm:$0xff]  ;;  %v272_v37 = vld [vmem:[%s983_s15 + $0x38] sm:$0xff] }
  0x39   : > { %340 = vmatpush.msra.mxu1 %v283_v11  ;;  %627 = vmatpush.msra.mxu3 %v283_v11  ;;  %v270_v33 = vld [vmem:[%s983_s15 + $0x28] sm:$0xff]  ;;  %v265_v34 = vld [vmem:[%s983_s15] sm:$0xff]  ;;  %v267_v38 = vld [vmem:[%s983_s15 + $0x10] sm:$0xff]  ;;  %v395_v1 = vmul.f32 %v704_v62, %v394_v0 }
  0x3a   : > { %312 = vmatpush.msra.mxu0 %v299_v12  ;;  %612 = vmatpush.msra.mxu2 %v299_v12  ;;  %v269_v35 = vld [vmem:[%s983_s15 + $0x20] sm:$0xff]  ;;  %v271_v39 = vld [vmem:[%s983_s15 + $0x30] sm:$0xff]  ;;  %s787_s15 = sshra.s32 %s503_s11, 4  ;;  %s788_s15 = int_to_ptr.hbm [resolvable:$true] %s787_s15 }
  0x3b   : > { %341 = vmatpush.msra.mxu1 %v282_v13  ;;  %628 = vmatpush.msra.mxu3 %v282_v13  ;;  %v700_v41 = vld [vmem:[%s1086_s2] ss:$0 sm:$0xff]  ;;  %v396_v2 = vadd.f32 %v704_v62, %v395_v1  ;;  %s789_s24 = scalar_lea.hbm %s788_s15, 32  ;;  %p794_p7 = scmp.lt.s32.totalorder %s788_s15, %s1089_s5 }
  0x3c   : > { %313 = vmatpush.msra.mxu0 %v298_v14  ;;  %613 = vmatpush.msra.mxu2 %v298_v14  ;;  %p790_p1 = scmp.ne.s32.totalorder %s788_s15, %s789_s24  ;;  %p795_p2 = scmp.lt.s32.totalorder %s793_s27, %s789_s24 }
  0x3d   : > { %342 = vmatpush.msra.mxu1 %v281_v15  ;;  %629 = vmatpush.msra.mxu3 %v281_v15  ;;  %v398_v3 = vsel %vm397_vm0, %v704_v62, %v396_v2 }
  0x3e   : > { %314 = vmatpush.msra.mxu0 %v297_v16  ;;  %614 = vmatpush.msra.mxu2 %v297_v16  ;;  %p791_p4 = pnand %p790_p1, %p949_p0  ;;  %p796_p9 = por %p795_p2, %p794_p7 }
  0x3f   : > { %343 = vmatpush.msra.mxu1 %v280_v17  ;;  %630 = vmatpush.msra.mxu3 %v280_v17 }
  0x40   : > { %315 = vmatpush.msra.mxu0 %v296_v18  ;;  %615 = vmatpush.msra.mxu2 %v296_v18  ;;  %p792_p8 = pneg %p791_p4 }
  0x41   : > { %344 = vmatpush.msra.mxu1 %v279_v19  ;;  %631 = vmatpush.msra.mxu3 %v279_v19 }
  0x42   : > { %316 = vmatpush.msra.mxu0 %v295_v20  ;;  %616 = vmatpush.msra.mxu2 %v295_v20  ;;  %p797_p10 = pnand %p796_p9, %p792_p8 }
  0x43   : > { %345 = vmatpush.msra.mxu1 %v278_v21  ;;  %632 = vmatpush.msra.mxu3 %v278_v21 }
  0x44   : > { %317 = vmatpush.msra.mxu0 %v294_v22  ;;  %617 = vmatpush.msra.mxu2 %v294_v22 }
  0x45   : > { %346 = vmatpush.msra.mxu1 %v277_v23  ;;  %633 = vmatpush.msra.mxu3 %v277_v23 }
  0x46   : > { %318 = vmatpush.msra.mxu0 %v293_v24  ;;  %618 = vmatpush.msra.mxu2 %v293_v24 }
  0x47   : > { %347 = vmatpush.msra.mxu1 %v276_v25  ;;  %634 = vmatpush.msra.mxu3 %v276_v25 }
  0x48   : > { %319 = vmatpush.msra.mxu0 %v292_v26  ;;  %619 = vmatpush.msra.mxu2 %v292_v26 }
  0x49   : > { %348 = vmatpush.msra.mxu1 %v275_v27  ;;  %635 = vmatpush.msra.mxu3 %v275_v27 }
  0x4a   : > { %320 = vmatpush.msra.mxu0 %v291_v28  ;;  %620 = vmatpush.msra.mxu2 %v291_v28 }
  0x4b   : > { %349 = vmatpush.msra.mxu1 %v274_v29  ;;  %636 = vmatpush.msra.mxu3 %v274_v29 }
  0x4c   : > { %321 = vmatpush.msra.mxu0 %v290_v30  ;;  %621 = vmatpush.msra.mxu2 %v290_v30 }
  0x4d   : > { %350 = vmatpush.msra.mxu1 %v273_v31  ;;  %637 = vmatpush.msra.mxu3 %v273_v31 }
  0x4e   : > { %322 = vmatmul.f32.vlgmr.msra.gmra.mxu0 %v266_v32  ;;  %328 = vmatmul.f32.vlgmr.msra.gmra.mxu2 %v270_v33 }
  0x4f   : > { %351 = vmatmul.f32.vlgmr.msra.gmra.mxu1 %v265_v34  ;;  %357 = vmatmul.f32.vlgmr.msra.gmra.mxu3 %v269_v35 }
  0x56   : > { %325 = vmatmul.f32.gmra.mxu0 %v268_v36  ;;  %331 = vmatmul.f32.gmra.mxu2 %v272_v37 }
  0x57   : > { %354 = vmatmul.f32.gmra.mxu1 %v267_v38  ;;  %360 = vmatmul.f32.gmra.mxu3 %v271_v39  ;;  %v701_v38 = vld [vmem:[%s1087_s3] ss:$0 sm:$0xff] }
  0xcb   : > { %v323_v40 = vpop.f32.mrf.mxu0 }
  0xcc   : > { %v352_v42 = vpop.f32.mrf.mxu1 }
  0xcd   : > { %v353_v43 = vadd.f32 %v352_v42, %v323_v40  ;;  %v702_v42 = vld [vmem:[%s1088_s4] ss:$0 sm:$0xff] }
  0xcf   : > { %v1004_v44 = vadd.f32 %v700_v41, %v353_v43 }
  0xd1   : > { %372 = vadd.xlane.f32.xlu0 %v1004_v44  ;;  %v329_v45 = vpop.f32.mrf.mxu2  ;;  %v380_v46 = vmul.f32 %v1004_v44, %v1004_v44 }
  0xd2   : > { %v358_v47 = vpop.f32.mrf.mxu3 }
  0xd3   : > { %v359_v48 = vadd.f32 %v358_v47, %v329_v45  ;;  %384 = vadd.xlane.f32.xlu2 %v380_v46  ;;  %v326_v49 = vpop.f32.mrf.mxu0 }
  0xd4   : > { %v355_v50 = vpop.f32.mrf.mxu1 }
  0xd5   : > { %v1009_v51 = vadd.f32 %v700_v41, %v359_v48  ;;  %v356_v52 = vadd.f32 %v355_v50, %v326_v49 }
  0xd7   : > { %v1011_v53 = vadd.f32 %v700_v41, %v356_v52  ;;  %376 = vadd.xlane.f32.xlu1 %v1009_v51  ;;  %v382_v59 = vmul.f32 %v1009_v51, %v1009_v51 }
  0xd9   : > { %374 = vadd.xlane.f32.xlu0 %v1011_v53  ;;  %v332_v54 = vpop.f32.mrf.mxu2  ;;  %v381_v55 = vmul.f32 %v1011_v53, %v1011_v53 }
  0xda   : > { %v361_v56 = vpop.f32.mrf.mxu3 }
  0xdb   : > { %v362_v57 = vadd.f32 %v361_v56, %v332_v54  ;;  %386 = vadd.xlane.f32.xlu2 %v381_v55 }
  0xdd   : > { %v1017_v58 = vadd.f32 %v700_v41, %v362_v57 }
  0xdf   : > { %378 = vadd.xlane.f32.xlu1 %v1017_v58  ;;  %v383_v60 = vmul.f32 %v1017_v58, %v1017_v58 }
  0xe1   : > { %388 = vadd.xlane.f32.xlu0 %v382_v59 }
  0xe7   : > { %390 = vadd.xlane.f32.xlu1 %v383_v60 }
 0x144   : > { %v373_v4 = vpop.xlane.xlu0 %372 }
 0x145   : > { %v399_v5 = vmul.f32 %v398_v3, %v373_v4 }
 0x146   : > { %v385_v6 = vpop.xlane.xlu2 %384 }
 0x147   : > { %v407_v7 = vmul.f32 %v399_v5, %v399_v5  ;;  %v403_v8 = vmul.f32 %v398_v3, %v385_v6  ;;  %v459_v37 = vsub.f32 %v1004_v44, %v399_v5 }
 0x149   : > { %v411_v9 = vsub.f32 %v403_v8, %v407_v7 }
 0x14a   : > { %v377_v10 = vpop.xlane.xlu1 %376 }
 0x14b   : > { %v415_v11 = vadd.f32 1e-05, %v411_v9  ;;  %v1024_v17 = vmul.f32 %v398_v3, %v377_v10 }
 0x14c   : > { %v375_v12 = vpop.xlane.xlu0 %374 }
 0x14d   : > { %705 = vrsqrt.f32 %v415_v11  ;;  %v400_v13 = vmul.f32 %v398_v3, %v375_v12  ;;  %v409_v24 = vmul.f32 %v1024_v17, %v1024_v17  ;;  %vm425_vm1 = vweird.f32 %v415_v11 }
 0x14e   : > { %v387_v14 = vpop.xlane.xlu2 %386 }
 0x14f   : > { %v404_v15 = vmul.f32 %v398_v3, %v387_v14  ;;  %v408_v16 = vmul.f32 %v400_v13, %v400_v13  ;;  %v460_v56 = vsub.f32 %v1011_v53, %v400_v13 }
 0x151   : > { %v412_v18 = vsub.f32 %v404_v15, %v408_v16 }
 0x152   : > { %v379_v19 = vpop.xlane.xlu1 %378 }
 0x153   : > { %v706_v20 = vpop.eup %705  ;;  %v416_v22 = vadd.f32 1e-05, %v412_v18  ;;  %v1028_v27 = vmul.f32 %v398_v3, %v379_v19 }
 0x154   : > { %v420_v21 = vmul.f32 %v706_v20, %v415_v11  ;;  %v389_v23 = vpop.xlane.xlu0 %388  ;;  %vm426_vm2 = vweird.f32 %v706_v20 }
 0x155   : > { %v405_v25 = vmul.f32 %v398_v3, %v389_v23  ;;  %707 = vrsqrt.f32 %v416_v22  ;;  %v410_v33 = vmul.f32 %v1028_v27, %v1028_v27  ;;  %vm427_vm3 = vmor %vm425_vm1, %vm426_vm2  ;;  %vm435_vm4 = vweird.f32 %v416_v22 }
 0x156   : > { %v421_v26 = vmul.f32 %v706_v20, %v420_v21 }
 0x157   : > { %v413_v28 = vsub.f32 %v405_v25, %v409_v24 }
 0x158   : > { %v422_v29 = vmul.f32 0.5, %v421_v26 }
 0x159   : > { %v417_v30 = vadd.f32 1e-05, %v413_v28 }
 0x15a   : > { %v423_v31 = vsub.f32 1.5, %v422_v29  ;;  %v391_v32 = vpop.xlane.xlu1 %390 }
 0x15b   : > { %709 = vrsqrt.f32 %v417_v30  ;;  %v406_v34 = vmul.f32 %v398_v3, %v391_v32  ;;  %v708_v35 = vpop.eup %707  ;;  %vm445_vm8 = vweird.f32 %v417_v30  ;;  %v461_v3 = vsub.f32 %v1009_v51, %v1024_v17 }
 0x15c   : > { %v424_v36 = vmul.f32 %v706_v20, %v423_v31  ;;  %v430_v39 = vmul.f32 %v708_v35, %v416_v22  ;;  %vm436_vm5 = vweird.f32 %v708_v35  ;;  %v462_v51 = vsub.f32 %v1017_v58, %v1028_v27 }
 0x15d   : > { %v414_v40 = vsub.f32 %v406_v34, %v410_v33  ;;  %vm437_vm6 = vmor %vm435_vm4, %vm436_vm5 }
 0x15e   : > { %v428_v41 = vsel %vm427_vm3, %v706_v20, %v424_v36  ;;  %v431_v45 = vmul.f32 %v708_v35, %v430_v39 }
 0x15f   : > { %v463_v43 = vmul.f32 %v459_v37, %v428_v41  ;;  %v418_v46 = vadd.f32 1e-05, %v414_v40 }
 0x160   : > { %v432_v49 = vmul.f32 0.5, %v431_v45 }
 0x161   : > { %v710_v47 = vpop.eup %709  ;;  %v471_v48 = vmul.f32 %v701_v38, %v463_v43  ;;  %711 = vrsqrt.f32 %v418_v46  ;;  %vm455_vm11 = vweird.f32 %v418_v46 }
 0x162   : > { %v440_v44 = vmul.f32 %v710_v47, %v417_v30  ;;  %v433_v52 = vsub.f32 1.5, %v432_v49  ;;  %vm446_vm7 = vweird.f32 %v710_v47 }
 0x163   : > { %v479_v50 = vadd.f32 %v702_v42, %v471_v48  ;;  %vm447_vm9 = vmor %vm445_vm8, %vm446_vm7 }
 0x164   : > { %v441_v54 = vmul.f32 %v710_v47, %v440_v44  ;;  %v434_v55 = vmul.f32 %v708_v35, %v433_v52 }
 0x165   : > { %483 = vst [vmem:[%s1040_s17] sm:$0xff] %v479_v50 }
 0x166   : > { %v442_v57 = vmul.f32 0.5, %v441_v54  ;;  %v438_v60 = vsel %vm437_vm6, %v708_v35, %v434_v55 }
 0x167   : > { %v712_v59 = vpop.eup %711  ;;  %v464_v61 = vmul.f32 %v460_v56, %v438_v60 }
 0x168   : > { %v443_v62 = vsub.f32 1.5, %v442_v57  ;;  %v450_v63 = vmul.f32 %v712_v59, %v418_v46  ;;  %vm456_vm10 = vweird.f32 %v712_v59 }
 0x169   : > { %v472_v0 = vmul.f32 %v701_v38, %v464_v61  ;;  %vm457_vm12 = vmor %vm455_vm11, %vm456_vm10 }
 0x16a   : > { %v444_v1 = vmul.f32 %v710_v47, %v443_v62  ;;  %v451_v2 = vmul.f32 %v712_v59, %v450_v63 }
 0x16b   : > { %v480_v4 = vadd.f32 %v702_v42, %v472_v0 }
 0x16c   : > { %v448_v53 = vsel %vm447_vm9, %v710_v47, %v444_v1  ;;  %v452_v5 = vmul.f32 0.5, %v451_v2 }
 0x16d   : > { %v465_v6 = vmul.f32 %v461_v3, %v448_v53  ;;  %484 = vst [vmem:[%s1040_s17 + $0x8] sm:$0xff] %v480_v4 }
 0x16e   : > { %v453_v7 = vsub.f32 1.5, %v452_v5 }
 0x16f   : > { %v473_v8 = vmul.f32 %v701_v38, %v465_v6 }
 0x170   : > { %v454_v9 = vmul.f32 %v712_v59, %v453_v7 }
 0x171   : > { %v481_v10 = vadd.f32 %v702_v42, %v473_v8 }
 0x172   : > { %v458_v11 = vsel %vm457_vm12, %v712_v59, %v454_v9 }
 0x173   : > { %485 = vst [vmem:[%s1040_s17 + $0x10] sm:$0xff] %v481_v10  ;;  %v466_v12 = vmul.f32 %v462_v51, %v458_v11 }
 0x175   : > { %v474_v13 = vmul.f32 %v701_v38, %v466_v12 }
 0x177   : > { %v482_v14 = vadd.f32 %v702_v42, %v474_v13 }
 0x179   : > { %486 = vst [vmem:[%s1040_s17 + $0x18] sm:$0xff] %v482_v14 }
 0x17a   : > { %800 = shalt.err (!%p797_p10)
}
 0x17b   : > { %s849_s28 = smov 128   ;;  %s850_s10 = smov 8  }
 0x17c   : > { %644 = dma.vmem_to_hbm [thread:$0]  (%p949_p0), %s501_s22, 512, %s503_s11, %s488_s8, %s849_s28, %s849_s28, %s850_s10  }
 0x17d PF: > { %p661_p11 = scmp.ge.s32.totalorder %s843_s21, 2  ;;  %s517_s17 = sand.u32 1, %s831_s18  }
 0x17e   : > { %s518_s16 = scalar_lea.sflag [#allocation4], %s517_s17 }
 0x17f   : > { %p655_p12 = pnand %p661_p11, %p916_p6 }
 0x181   : > { %p656_p13 = pneg %p655_p12 }
 0x183   : > { %826 = dma.done.wait (%p656_p13), %s518_s16, 512  }
 0x184   : > { %828 = vsyncadd (%p656_p13), %s518_s16, 4294966784  ;;  %p19_p3 = scmp.ge.s32.totalorder %s933_s7, 6   ;;  %s1097_s18 = smov %s835_s19 }
 0x185   : > { %s1098_s19 = smov %s839_s20  ;;  %s1099_s20 = smov %s945_s12 }
 0x186   : > { %s1100_s21 = smov %s933_s7  ;;  %21 = sbr.rel (!%p19_p3) target bundleno = 6 (0x6), region = 90 }
 0x18b   :  { %524 = vsyncpa [#allocation3], 1 }
 0x18c   :  { %526 = vsyncpa [#allocation3 + $0x1], 1 }
 0x18d   :  { %527 = vsyncpa [#allocation6], 1 }
 0x18e   :  { %528 = vsyncpa [#allocation4], 1 }
 0x18f   :  { %530 = vsyncpa [#allocation4 + $0x1], 1 }

</bundles_post_ra>
